<compile_context>
chip_gen: v7x
topology: tpu7x:2x2x1
jax: 0.10.0
libtpu: 0.0.40
codegen_flags: <defaults>
</compile_context>

<pallas_src>
import jax
import jax.numpy as jnp
from jax.experimental import pallas as pl
from jax.experimental.pallas import tpu as pltpu


def _swish_kernel(beta_ref, x_ref, o_ref):
    # beta_ref: (1,) scalar in SMEM; x_ref/o_ref: (block_rows, LANE) VMEM tiles.
    beta = beta_ref[0].astype(jnp.float32)          # single scalar read / cast
    xf = x_ref[...].astype(jnp.float32)             # f32 math: safe on all gens
    t = 1.0 / (1.0 + jnp.exp(-(beta * xf)))         # sigmoid(beta * x)
    o_ref[...] = (xf * t).astype(o_ref.dtype)


def swish(x, beta, *, target_block_bytes=2 * 1024 * 1024):
    """x: arbitrary-shape array (NCHW in the module); beta: shape-(1,) scalar."""
    orig_shape = x.shape
    dtype = x.dtype
    total = x.size
    itemsize = jnp.dtype(dtype).itemsize

    flat = x.reshape(-1)

    # Pick a lane-dense width: largest multiple of 128 (<=1024) dividing total.
    lane = None
    for cand in (1024, 512, 256, 128):
        if total % cand == 0:
            lane = cand
            break
    pad = 0
    if lane is None:
        # Rare fallback: pad the flat tail once (< LANE elements), slice after.
        lane = 512
        pad = (-total) % lane
        flat = jnp.pad(flat, (0, pad))

    rows = flat.size // lane
    x2d = flat.reshape(rows, lane)

    # Sublane tile must respect dtype packing: 8 (f32), 16 (bf16), 32 (int8/fp8).
    sub_mult = max(8, 32 // itemsize)

    # Block rows targeting ~2 MiB per block (double-buffered in+out stays well
    # under v7x's 32 MiB scoped VMEM).
    br = target_block_bytes // (lane * itemsize)
    br = max(sub_mult, (br // sub_mult) * sub_mult)
    if br >= rows:
        block_rows = rows          # single full-extent block (always legal)
    else:
        block_rows = br            # multiple of sub_mult, divisible by (8,128)

    grid = (pl.cdiv(rows, block_rows),)

    out2d = pl.pallas_call(
        _swish_kernel,
        out_shape=jax.ShapeDtypeStruct((rows, lane), dtype),
        grid_spec=pltpu.PrefetchScalarGridSpec(
            num_scalar_prefetch=0,
            grid=grid,
            in_specs=[
                pl.BlockSpec(memory_space=pltpu.SMEM),              # beta scalar
                pl.BlockSpec((block_rows, lane), lambda i: (i, 0)), # x tile
            ],
            out_specs=pl.BlockSpec((block_rows, lane), lambda i: (i, 0)),
        ),
        compiler_params=pltpu.CompilerParams(
            dimension_semantics=("parallel",),   # megacore sharding on v7x
        ),
    )(beta, x2d)

    out_flat = out2d.reshape(-1)
    if pad:
        out_flat = out_flat[:total]
    return out_flat.reshape(orig_shape)


if __name__ == "__main__":
    key = jax.random.PRNGKey(0)
    k_beta, k_x = jax.random.split(key)

    # nn.Parameter(torch.randn(1)) -> deterministic scalar parameter of shape (1,)
    beta = jax.random.normal(k_beta, (1,), dtype=jnp.float32)
    # Small NCHW input consistent with a conv-net activation.
    x = jax.random.normal(k_x, (2, 4, 16, 16), dtype=jnp.float32)

    y = swish(x, beta)
    jax.block_until_ready(y)

    # Reference check in plain JAX.
    y_ref = x * jax.nn.sigmoid(beta[0] * x)
    assert y.shape == x.shape and y.dtype == x.dtype
    assert jnp.allclose(y, y_ref, atol=1e-6, rtol=1e-6)

    print("KERNEL_OK")
</pallas_src>

<mosaic_0001>
module attributes {stable_mosaic.version = 11 : i64} {
  func.func @_swish_kernel(%arg0: i32, %arg1: memref<1xf32, #tpu.memory_space<smem>>, %arg2: memref<2x1024xf32, #tpu.memory_space<vmem>>, %arg3: memref<2x1024xf32, #tpu.memory_space<vmem>>) attributes {dimension_semantics = [#tpu.dimension_semantics<parallel>], iteration_bounds = array<i64: 1>, scalar_prefetch = 0 : i64, scratch_operands = 0 : i64, tpu.core_type = #tpu.core_type<tc>, window_params = [{transform_indices = @transform_0, window_bounds = array<i64: 1>}, {transform_indices = @transform_1, window_bounds = array<i64: 2, 1024>}, {transform_indices = @transform_2, window_bounds = array<i64: 2, 1024>}]} {
    %c0 = arith.constant 0 : index
    %0 = memref.load %arg1[%c0] : memref<1xf32, #tpu.memory_space<smem>>
    %c0_0 = arith.constant 0 : index
    %c0_1 = arith.constant 0 : index
    %1 = vector.load %arg2[%c0_0, %c0_1] : memref<2x1024xf32, #tpu.memory_space<vmem>>, vector<2x1024xf32>
    %2 = vector.broadcast %0 : f32 to vector<2x1024xf32>
    %3 = arith.mulf %2, %1 : vector<2x1024xf32>
    %cst = arith.constant 0.000000e+00 : f32
    %4 = vector.broadcast %cst : f32 to vector<2x1024xf32>
    %5 = arith.subf %4, %3 : vector<2x1024xf32>
    %6 = math.exp %5 : vector<2x1024xf32>
    %cst_2 = arith.constant 1.000000e+00 : f32
    %7 = vector.broadcast %cst_2 : f32 to vector<2x1024xf32>
    %8 = arith.addf %7, %6 : vector<2x1024xf32>
    %cst_3 = arith.constant 1.000000e+00 : f32
    %9 = vector.broadcast %cst_3 : f32 to vector<2x1024xf32>
    %10 = arith.divf %9, %8 : vector<2x1024xf32>
    %11 = arith.mulf %1, %10 : vector<2x1024xf32>
    %c0_4 = arith.constant 0 : index
    %c0_5 = arith.constant 0 : index
    %12 = vector.load %arg3[%c0_4, %c0_5] : memref<2x1024xf32, #tpu.memory_space<vmem>>, vector<2x1024xf32>
    tpu.vector_store %arg3[%c0_4, %c0_5], %11 {strides = array<i32>} : memref<2x1024xf32, #tpu.memory_space<vmem>>, vector<2x1024xf32>,
    return
  }
  func.func @transform_0(%arg0: i32) -> i32 {
    %c0_i32 = arith.constant 0 : i32
    %c0_i32_0 = arith.constant 0 : i32
    return %c0_i32 : i32
  }
  func.func @transform_1(%arg0: i32) -> (i32, i32) {
    %c0_i32 = arith.constant 0 : i32
    %c0_i32_0 = arith.constant 0 : i32
    return %arg0, %c0_i32 : i32, i32
  }
  func.func @transform_2(%arg0: i32) -> (i32, i32) {
    %c0_i32 = arith.constant 0 : i32
    %c0_i32_0 = arith.constant 0 : i32
    return %arg0, %c0_i32 : i32, i32
  }
}

</mosaic_0001>

<bundles_post_ra>
// kernel: tpu_custom_call.1
= control target key start
LH: loop header
LB: loop body
LE: loop exit
PB: predicated region body
PF: predicated region fallthrough
CT: control target
= control target key end

     0   :  { %8 = vsyncpa [#allocation4], 0  ;;  %s164_s0 = inlined_call_operand.<no memory space> [shape: f32[1], index: 0, kind: input, shape index: {}]   ;;  %s165_s1 = inlined_call_operand.hbm [shape: f32[2,1024], index: 1, kind: input, shape index: {}]   ;;  %s166_s2 = inlined_call_operand.hbm [shape: f32[2,1024], index: 2, kind: output, shape index: {}]  }
   0x1   :  { %9 = vsyncpa [#allocation5], 0  ;;  %s120_s9 = smov [#allocation3]   ;;  %s72_s13 = scalar_lea.hbm %s165_s1, 256 }
   0x2   :  { %s18_s10 = sshll.u32 %s120_s9, 4  ;;  %p73_p0 = scmp.ne.s32.totalorder %s165_s1, %s72_s13  ;;  %s19_s10 = int_to_ptr.vmem [resolvable:$true] %s18_s10 }
   0x3   :  { %p76_p1 = scmp.lt.u32.totalorder %s72_s13, %s165_s1 }
   0x5   :  { %p78_p2 = pnand %p76_p1, %p73_p0 }
   0x7   :  { %81 = shalt.err (!%p78_p2)
}
   0x8   :  { %s82_s18 = scalar_lea.vmem %s19_s10, 256  ;;  %p87_p4 = scmp.lt.s32.totalorder %s19_s10, %s19_s10 }
   0x9   :  { %p83_p3 = scmp.ne.s32.totalorder %s19_s10, %s82_s18  ;;  %p88_p5 = scmp.lt.s32.totalorder %s82_s18, %s82_s18 }
   0xb   :  { %p89_p6 = por %p88_p5, %p87_p4 }
   0xd   :  { %p90_p7 = pnand %p89_p6, %p83_p3 }
   0xf   :  { %93 = shalt.err (!%p90_p7)
}
  0x10   :  { %21 = dma.hbm_to_vmem [thread:$0]  %s165_s1, 256, %s19_s10, [#allocation4]  }
  0x11   :  { %116 = dma.done.wait [#allocation4], 256  }
  0x12   :  { %117 = vsyncadd [#allocation4], 4294967040  ;;  %v28_v0 = vstv %s164_s0  ;;  %v26_v1 = vld [vmem:[#allocation3] sm:$0xff]  ;;  %v27_v2 = vld [vmem:[#allocation3 + $0x8] sm:$0xff]  ;;  %s121_s1 = smov [#allocation6]  }
  0x13   :  { %v29_v3 = vmul.f32 %v28_v0, %v26_v1  ;;  %v30_v4 = vmul.f32 %v28_v0, %v27_v2  ;;  %s53_s23 = sshll.u32 %s121_s1, 4  ;;  %s54_s23 = int_to_ptr.vmem [resolvable:$true] %s53_s23 }
  0x14   :  { %s94_s0 = scalar_lea.vmem %s54_s23, 256  ;;  %p99_p9 = scmp.lt.s32.totalorder %s54_s23, %s54_s23 }
  0x15   :  { %v31_v5 = vsub.f32 0.0, %v29_v3  ;;  %v32_v6 = vsub.f32 0.0, %v30_v4  ;;  %p95_p8 = scmp.ne.s32.totalorder %s54_s23, %s94_s0  ;;  %p100_p10 = scmp.lt.s32.totalorder %s94_s0, %s94_s0 }
  0x17   :  { %v33_v7 = vmul.f32 1.442695, %v31_v5  ;;  %v35_v8 = vmul.f32 1.442695, %v32_v6  ;;  %p101_p11 = por %p100_p10, %p99_p9 }
  0x19   :  { %64 = vpow2.f32 %v33_v7  ;;  %p102_p12 = pnand %p101_p11, %p95_p8 }
  0x1a   :  { %66 = vpow2.f32 %v35_v8 }
  0x23   :  { %v65_v9 = vpop.eup %64 }
  0x24   :  { %v67_v10 = vpop.eup %66  ;;  %v37_v11 = vadd.f32 1.0, %v65_v9 }
  0x25   :  { %v38_v12 = vadd.f32 1.0, %v67_v10 }
  0x26   :  { %68 = vrcp.f32 %v37_v11 }
  0x27   :  { %70 = vrcp.f32 %v38_v12 }
  0x30   :  { %v69_v13 = vpop.eup %68 }
  0x31   :  { %v71_v14 = vpop.eup %70  ;;  %v43_v15 = vmul.f32 %v69_v13, %v26_v1 }
  0x32   :  { %v44_v16 = vmul.f32 %v71_v14, %v27_v2 }
  0x33   :  { %45 = vst [vmem:[#allocation6] sm:$0xff] %v43_v15 }
  0x34   :  { %46 = vst [vmem:[#allocation6 + $0x8] sm:$0xff] %v44_v16 }
  0x35   :  { %105 = shalt.err (!%p102_p12)
}
  0x36   :  { %s106_s26 = scalar_lea.hbm %s166_s2, 256 }
  0x37   :  { %p107_p13 = scmp.ne.s32.totalorder %s166_s2, %s106_s26  ;;  %p110_p0 = scmp.lt.u32.totalorder %s106_s26, %s166_s2 }
  0x39   :  { %p112_p1 = pnand %p110_p0, %p107_p13 }
  0x3b   :  { %115 = shalt.err (!%p112_p1)
}
  0x3c   :  { %56 = dma.vmem_to_hbm [thread:$0]  %s54_s23, 256, %s166_s2, [#allocation5]  }
  0x3d   :  { %118 = dma.done.wait [#allocation5], 256  }
  0x3e   :  { %119 = vsyncadd [#allocation5], 4294967040 }
  0x3f   :  { %60 = vsyncpa [#allocation4], 1 }
  0x40   :  { %61 = vsyncpa [#allocation5], 1 }

</bundles_post_ra>
